<compile_context>
chip_gen: v7x
topology: tpu7x:2x2x1
jax: 0.10.0
libtpu: 0.0.40
codegen_flags: <defaults>
</compile_context>

<pallas_src>
import functools
import math

import jax
import jax.numpy as jnp
from jax.experimental import pallas as pl
from jax.experimental.pallas import tpu as pltpu


# --------------------------------------------------------------------------- #
# PE table construction — identical to the PyTorch __init__ double loop.
# Built once at init time in plain JAX (host/XLA side, never per forward).
# --------------------------------------------------------------------------- #
def _build_pe_table(d_model: int, max_seq_len: int = 641, dtype=jnp.float32):
    assert d_model % 2 == 0, "PyTorch loop writes pairs (i, i+1); d_model must be even"
    pos = jnp.arange(max_seq_len, dtype=jnp.float32)[:, None]          # [L, 1]
    i_even = jnp.arange(0, d_model, 2, dtype=jnp.float32)[None, :]     # [1, D/2]
    sin_vals = jnp.sin(pos / jnp.power(10000.0, 2.0 * i_even / d_model))
    cos_vals = jnp.cos(pos / jnp.power(10000.0, 2.0 * (i_even + 1.0) / d_model))
    pe = jnp.zeros((max_seq_len, d_model), jnp.float32)
    pe = pe.at[:, 0::2].set(sin_vals)
    pe = pe.at[:, 1::2].set(cos_vals)
    return pe[None, :, :].astype(dtype)                                 # [1, L, D]


# --------------------------------------------------------------------------- #
# Kernel: pure VPU scale-and-add, f32 math, pe broadcasts over x's rows.
# Works for 2-D ([rows, cols]) and 3-D ([b, s, d]) blocks alike.
# --------------------------------------------------------------------------- #
def _pos_enc_kernel(x_ref, pe_ref, o_ref, *, scale):
    x = x_ref[...].astype(jnp.float32)
    p = pe_ref[...].astype(jnp.float32)
    o_ref[...] = (x * scale + p).astype(o_ref.dtype)


# --------------------------------------------------------------------------- #
# Tiling helpers — all sizing uses padded (sublane, lane) footprints.
# --------------------------------------------------------------------------- #
def _round_up(v, m):
    return -(-v // m) * m


def _sublane_tile(dtype):
    return {4: 8, 2: 16, 1: 32}.get(jnp.dtype(dtype).itemsize, 8)


def _padded_block_bytes(rows, cols, dtype):
    """VMEM bytes of one (rows, cols) tile after (sublane, lane) padding."""
    itemsize = jnp.dtype(dtype).itemsize
    return (_round_up(max(rows, 1), _sublane_tile(dtype))
            * _round_up(max(cols, 1), 128) * itemsize)


def _divisors(n):
    out, i = set(), 1
    while i * i <= n:
        if n % i == 0:
            out.add(i)
            out.add(n // i)
        i += 1
    return sorted(out)


def _vmem_budget():
    """(double-buffered working-set budget, vmem_limit_bytes) per generation."""
    cap = 64 << 20  # assume v7x (64 MiB / TC) if the query is unavailable
    try:
        cap = int(getattr(pltpu.get_tpu_info(), "vmem_capacity_bytes", cap))
    except Exception:
        pass
    if cap >= (96 << 20):            # v5e / v6e: 128 MiB physical VMEM
        return 32 << 20, 64 << 20    # larger tiles amortize ~0.35 us/step
    return 18 << 20, 40 << 20        # v7x: keep padded working set well < 64 MiB


def _working_set_bytes(row_tile, col_tile, x_dtype, pe_rows, pe_dtype):
    bx = _padded_block_bytes(row_tile, col_tile, x_dtype)      # x block (== out block)
    bpe = _padded_block_bytes(pe_rows, col_tile, pe_dtype)     # pe block
    return 2 * (2 * bx + bpe)                                  # all double-buffered


def _choose_col_tile(total_cols, row_tile, x_dtype, pe_rows, pe_dtype, budget,
                     n_row_blocks):
    """Largest 128-multiple dividing total_cols whose padded, double-buffered
    working set fits `budget`; keeps >= 2 total grid steps when possible so
    ('parallel', ...) can shard across v7x's two TensorCores."""
    assert total_cols % 128 == 0
    cands = sorted(128 * d for d in _divisors(total_cols // 128))
    fit = [c for c in cands
           if _working_set_bytes(row_tile, c, x_dtype, pe_rows, pe_dtype) <= budget]
    if not fit:
        fit = [cands[0]]             # minimal tile; budget is advisory headroom
    ct = max(fit)
    if n_row_blocks * (total_cols // ct) < 2:
        smaller = [c for c in fit if total_cols // c >= 2]
        if smaller:
            ct = max(smaller)
    return ct


def _choose_row_tile(n_rows, x_dtype, pe_dtype, budget):
    """Row tile for the [B, S*D] path: whole batch when it fits the padded
    budget at the minimal 128-lane column tile, else the largest
    sublane-aligned divisor of B that does (feedback: tile batch for large B)."""
    def fits(rt):
        return _working_set_bytes(rt, 128, x_dtype, 1, pe_dtype) <= budget

    if fits(n_rows):
        return n_rows
    st = _sublane_tile(x_dtype)
    divs = sorted(_divisors(n_rows), reverse=True)
    for want_aligned in (True, False):
        for d in divs:
            if fits(d) and (not want_aligned or d % st == 0):
                return d
    return 1


def _choose_chunk_k(B, cols, x_dtype):
    """Small-batch sublane fix: split each flattened batch row [cols] into k
    sub-rows of cols//k so a (k, col_tile) block has full sublane occupancy.
    Returns None when B already fills the sublanes or cols can't be split."""
    st = _sublane_tile(x_dtype)
    if B >= st or cols % 128 != 0:
        return None
    k = st
    while k * 128 <= cols:
        if cols % (k * 128) == 0:      # k | cols and (cols/k) % 128 == 0
            return k
        k += st
    return None


def _fallback_tiles(B, S, D, x_dtype, pe_dtype, budget):
    """Tiles for the S*D-not-128-aligned path: (S, D) full-extent blocks,
    batch axis tiled; if even one batch row is too big, tile S too (VMEM cap)."""
    def ws(bt, s_rows):
        bx = bt * _padded_block_bytes(s_rows, D, x_dtype)
        bpe = _padded_block_bytes(s_rows, D, pe_dtype)
        return 2 * (2 * bx + bpe)

    for bt in sorted(_divisors(B), reverse=True):
        if ws(bt, S) <= budget:
            return bt, S
    s_cands = sorted([d for d in _divisors(S) if d % 8 == 0], reverse=True) or [S]
    for s_rows in s_cands:
        if ws(1, s_rows) <= budget:
            return 1, s_rows
    return 1, s_cands[-1]


# --------------------------------------------------------------------------- #
# Forward wrapper.
# --------------------------------------------------------------------------- #
def positional_encoder(x, pe, d_model, *, use_pallas_min_elems: int = 0):
    """x: [B, S, D], pe: [1, max_seq_len, D] (stored dtype, e.g. f32).
    Returns x * sqrt(d_model) + pe[:, :S], in x's dtype (math done in f32)."""
    B, S, D = x.shape
    assert D == d_model
    _, L, Dp = pe.shape
    assert Dp == D
    assert S <= L, f"seq_len {S} exceeds max_seq_len {L}"

    scale = math.sqrt(d_model)

    # Opt-in fused path for tiny inputs (pallas_call/DMA setup would dominate).
    if B * S * D < use_pallas_min_elems:
        out = x.astype(jnp.float32) * scale + pe[:, :S, :].astype(jnp.float32)
        return out.astype(x.dtype)

    cols = S * D
    isz_x = jnp.dtype(x.dtype).itemsize
    isz_pe = jnp.dtype(pe.dtype).itemsize
    budget, vmem_limit = _vmem_budget()
    kernel = functools.partial(_pos_enc_kernel, scale=scale)
    cost = pl.CostEstimate(
        flops=2 * B * S * D,
        transcendentals=0,
        bytes_accessed=(2 * B * isz_x + isz_pe) * S * D,
    )

    if cols % 128 == 0:
        k = _choose_chunk_k(B, cols, x.dtype)
        if k is not None:
            # ----- small-batch path: full sublane occupancy -----------------
            cols_k = cols // k
            x3 = x.reshape(B * k, cols_k)                  # free, contiguous
            # pe for the first S positions viewed as k sub-rows per sequence
            # (pure reshape when S == max_seq_len, else a small S*D copy).
            pe_mat = pe.reshape(L * D)[:cols].reshape(k, cols_k)
            col_tile = _choose_col_tile(cols_k, k, x.dtype, k, pe.dtype,
                                        budget, n_row_blocks=B)
            n_col = cols_k // col_tile
            out3 = pl.pallas_call(
                kernel,
                out_shape=jax.ShapeDtypeStruct((B * k, cols_k), x.dtype),
                grid_spec=pltpu.PrefetchScalarGridSpec(
                    num_scalar_prefetch=0,
                    # column axis outermost: the pe tile index is constant
                    # across the inner batch sweep -> each pe tile DMA'd once.
                    grid=(n_col, B),
                    in_specs=[
                        pl.BlockSpec((k, col_tile), lambda c, b: (b, c)),
                        pl.BlockSpec((k, col_tile), lambda c, b: (0, c)),
                    ],
                    out_specs=pl.BlockSpec((k, col_tile), lambda c, b: (b, c)),
                ),
                compiler_params=pltpu.CompilerParams(
                    dimension_semantics=("parallel", "parallel"),
                    vmem_limit_bytes=vmem_limit),
                cost_estimate=cost,
            )(x3, pe_mat)
            return out3.reshape(B, S, D)

        # ----- general lane-dense path: [B, S*D] slabs, pe broadcast --------
        x2 = x.reshape(B, cols)
        pe_flat = pe.reshape(1, L * D)        # persistent table, no slice/copy
        row_tile = _choose_row_tile(B, x.dtype, pe.dtype, budget)
        n_row = B // row_tile
        col_tile = _choose_col_tile(cols, row_tile, x.dtype, 1, pe.dtype,
                                    budget, n_row_blocks=n_row)
        n_col = cols // col_tile
        out2 = pl.pallas_call(
            kernel,
            out_shape=jax.ShapeDtypeStruct((B, cols), x.dtype),
            grid_spec=pltpu.PrefetchScalarGridSpec(
                num_scalar_prefetch=0,
                grid=(n_col, n_row),          # pe tile constant over inner axis
                in_specs=[
                    pl.BlockSpec((row_tile, col_tile), lambda c, r: (r, c)),
                    pl.BlockSpec((1, col_tile), lambda c, r: (0, c)),
                ],
                out_specs=pl.BlockSpec((row_tile, col_tile), lambda c, r: (r, c)),
            ),
            compiler_params=pltpu.CompilerParams(
                dimension_semantics=("parallel", "parallel"),
                vmem_limit_bytes=vmem_limit),
            cost_estimate=cost,
        )(x2, pe_flat)
        return out2.reshape(B, S, D)

    # ----- fallback: S*D not 128-aligned -----------------------------------
    # (S, D) stay full-extent (block == array dims satisfies the (8,128) rule);
    # batch (and if needed sequence) axes are tiled so VMEM stays capped.
    # pe is sliced to the live S rows once (an S*D copy, small vs. x traffic).
    pe_s = pe[:, :S, :]
    b_tile, s_tile = _fallback_tiles(B, S, D, x.dtype, pe.dtype, budget)
    out = pl.pallas_call(
        kernel,
        out_shape=jax.ShapeDtypeStruct((B, S, D), x.dtype),
        grid_spec=pltpu.PrefetchScalarGridSpec(
            num_scalar_prefetch=0,
            grid=(S // s_tile, B // b_tile),  # seq outer -> pe tile fetched once
            in_specs=[
                pl.BlockSpec((b_tile, s_tile, D), lambda s, b: (b, s, 0)),
                pl.BlockSpec((1, s_tile, D), lambda s, b: (0, s, 0)),
            ],
            out_specs=pl.BlockSpec((b_tile, s_tile, D), lambda s, b: (b, s, 0)),
        ),
        compiler_params=pltpu.CompilerParams(
            dimension_semantics=("parallel", "parallel"),
            vmem_limit_bytes=vmem_limit),
        cost_estimate=cost,
    )(x, pe_s)
    return out


if __name__ == "__main__":
    key = jax.random.PRNGKey(0)

    # 1) Module-consistent small shapes: batch=2, seq=8, d_model=32.
    B, S, D = 2, 8, 32
    MAX_SEQ_LEN = 641
    pe32 = _build_pe_table(D, MAX_SEQ_LEN)
    x1 = jax.random.normal(key, (B, S, D), dtype=jnp.float32)
    out1 = jax.block_until_ready(positional_encoder(x1, pe32, D))
    ref1 = x1 * math.sqrt(D) + pe32[:, :S, :]
    assert out1.shape == (B, S, D)
    assert jnp.allclose(out1, ref1, atol=1e-5, rtol=1e-5)

    # 2) Longer sequence: exercises the small-batch sublane-density path.
    S2 = 256
    x2 = jax.random.normal(jax.random.fold_in(key, 1), (B, S2, D), dtype=jnp.float32)
    out2 = jax.block_until_ready(positional_encoder(x2, pe32, D))
    ref2 = x2 * math.sqrt(D) + pe32[:, :S2, :]
    assert jnp.allclose(out2, ref2, atol=1e-5, rtol=1e-5)

    # 3) d_model=24 (S*D not 128-aligned): exercises the capped 3-D fallback.
    D3, S3 = 24, 8
    pe24 = _build_pe_table(D3, MAX_SEQ_LEN)
    x3 = jax.random.normal(jax.random.fold_in(key, 2), (B, S3, D3), dtype=jnp.float32)
    out3 = jax.block_until_ready(positional_encoder(x3, pe24, D3))
    ref3 = x3 * math.sqrt(D3) + pe24[:, :S3, :]
    assert jnp.allclose(out3, ref3, atol=1e-5, rtol=1e-5)

    print("KERNEL_OK")
</pallas_src>

<mosaic_0001>
module attributes {stable_mosaic.version = 11 : i64} {
  func.func @_pos_enc_kernel(%arg0: i32, %arg1: i32, %arg2: memref<2x128xf32, #tpu.memory_space<vmem>>, %arg3: memref<1x128xf32, #tpu.memory_space<vmem>>, %arg4: memref<2x128xf32, #tpu.memory_space<vmem>>) attributes {dimension_semantics = [#tpu.dimension_semantics<parallel>, #tpu.dimension_semantics<parallel>], iteration_bounds = array<i64: 2, 1>, scalar_prefetch = 0 : i64, scratch_operands = 0 : i64, tpu.core_type = #tpu.core_type<tc>, window_params = [{transform_indices = @transform_0, window_bounds = array<i64: 2, 128>}, {transform_indices = @transform_1, window_bounds = array<i64: 1, 128>}, {transform_indices = @transform_2, window_bounds = array<i64: 2, 128>}]} {
    %c0 = arith.constant 0 : index
    %c0_0 = arith.constant 0 : index
    %0 = vector.load %arg2[%c0, %c0_0] : memref<2x128xf32, #tpu.memory_space<vmem>>, vector<2x128xf32>
    %c0_1 = arith.constant 0 : index
    %c0_2 = arith.constant 0 : index
    %1 = vector.load %arg3[%c0_1, %c0_2] : memref<1x128xf32, #tpu.memory_space<vmem>>, vector<1x128xf32>
    %cst = arith.constant 5.65685415 : f32
    %2 = vector.broadcast %cst : f32 to vector<2x128xf32>
    %3 = arith.mulf %0, %2 : vector<2x128xf32>
    %4 = vector.broadcast %1 : vector<1x128xf32> to vector<2x128xf32>
    %5 = arith.addf %3, %4 : vector<2x128xf32>
    %c0_3 = arith.constant 0 : index
    %c0_4 = arith.constant 0 : index
    %6 = vector.load %arg4[%c0_3, %c0_4] : memref<2x128xf32, #tpu.memory_space<vmem>>, vector<2x128xf32>
    tpu.vector_store %arg4[%c0_3, %c0_4], %5 {strides = array<i32>} : memref<2x128xf32, #tpu.memory_space<vmem>>, vector<2x128xf32>,
    return
  }
  func.func @transform_0(%arg0: i32, %arg1: i32) -> (i32, i32) {
    %c0_i32 = arith.constant 0 : i32
    return %arg1, %arg0 : i32, i32
  }
  func.func @transform_1(%arg0: i32, %arg1: i32) -> (i32, i32) {
    %c0_i32 = arith.constant 0 : i32
    %c0_i32_0 = arith.constant 0 : i32
    return %c0_i32, %arg0 : i32, i32
  }
  func.func @transform_2(%arg0: i32, %arg1: i32) -> (i32, i32) {
    %c0_i32 = arith.constant 0 : i32
    return %arg1, %arg0 : i32, i32
  }
}

</mosaic_0001>

<bundles_post_ra>
// kernel: tpu_custom_call.1
= control target key start
LH: loop header
LB: loop body
LE: loop exit
PB: predicated region body
PF: predicated region fallthrough
CT: control target
= control target key end

     0   :  { %7 = vsyncpa [#allocation3], 0  ;;  %s803_s0 = inlined_call_operand.hbm [shape: f32[2,256], index: 0, kind: input, shape index: {}]   ;;  %s804_s1 = inlined_call_operand.hbm [shape: f32[1,20512], index: 1, kind: input, shape index: {}]   ;;  %s805_s2 = inlined_call_operand.hbm [shape: f32[2,256], index: 2, kind: output, shape index: {}]  }
   0x1   :  { %9 = vsyncpa [#allocation3 + $0x1], 0 }
   0x2   :  { %10 = vsyncpa [#allocation6], 0 }
   0x3   :  { %12 = vsyncpa [#allocation6 + $0x1], 0 }
   0x4   :  { %13 = vsyncpa [#allocation4], 0 }
   0x5   :  { %15 = vsyncpa [#allocation4 + $0x1], 0  ;;  %s588_s9 = smov 0   ;;  %s590_s10 = smov 0  }
   0x6   :  { %s592_s11 = smov 0   ;;  %s594_s12 = smov 0  }
   0x7   :  { %s596_s13 = smov 0   ;;  %s598_s14 = smov 0  }
   0x8 LB: > { %s340_s15 = sadd.s32 4294967295, %s568_s14   ;;  %s341_s16 = sadd.s32 4294967294, %s568_s14   ;;  %s568_s14 = sphi %s598_s14, %s21_s14   ;;  %s564_s13 = sphi %s596_s13, %s825_s13   ;;  %s560_s12 = sphi %s594_s12, %s824_s12   ;;  %s556_s11 = sphi %s592_s11, %s823_s11   ;;  %s552_s10 = sphi %s590_s10, %s822_s10   ;;  %s548_s9 = sphi %s588_s9, %s821_s9  }
   0x9   : > { %s33_s17 = sadd.s32 1, %s564_s13  ;;  %s42_s18 = sadd.s32 1, %s556_s11 }
   0xa   : > { %p35_p0 = scmp.ge.s32.totalorder %s33_s17, 2  ;;  %p49_p1 = scmp.ne.s32.totalorder %s556_s11, %s552_s10 }
   0xb   : > { %p50_p2 = scmp.eq.s32.totalorder %s568_s14, 0  ;;  %p55_p3 = scmp.ne.s32.totalorder %s552_s10, %s548_s9 }
   0xc   : > { %s827_s17 = smov (%p35_p0, %s33_s17), 0  ;;  %p56_p5 = scmp.eq.s32.totalorder %s340_s15, 0 }
   0xd   : > { %p629_p4 = por %p50_p2, %p49_p1  ;;  %s38_s20 = ssub.s32 %s564_s13, %s827_s17 }
   0xe   : > { %p107_p6 = scmp.eq.s32.totalorder %s340_s15, 1  ;;  %p40_p7 = scmp.eq.s32.totalorder %s38_s20, 0 }
   0xf   : > { %p635_p8 = por %p56_p5, %p55_p3  ;;  %p113_p10 = scmp.eq.s32.totalorder %s341_s16, 1 }
  0x10   : > { %p639_p9 = por %p107_p6, %p49_p1  ;;  %p372_p13 = scmp.lt.s32.totalorder %s568_s14, 2 }
  0x11   : > { %s809_s21 = scalar_select %p635_p8, 1, 0 }
  0x12   : > { %s810_s22 = scalar_select %p639_p9, 1, 0 }
  0x13   : > { %s644_s23 = scalar_select %p40_p7, %s556_s11, %s42_s18  }
  0x14   : > { %p646_p11 = por %p113_p10, %p55_p3  ;;  %s653_s25 = sand.u32 1, %s556_s11  }
  0x15   : > { %s344_s26 = sshll.u32 %s653_s25, 1  ;;  %s345_s27 = sshll.u32 %s564_s13, 5 }
  0x16   : > { %s811_s24 = scalar_select %p646_p11, 1, 0 }
  0x17   : > { %s660_s30 = scalar_lea.hbm %s803_s0, %s345_s27  ;;  %s137_s3 = scalar_lea.vmem [#allocation2], %s344_s26 }
  0x18   : > { %s146_s4 = sshll.u32 %s137_s3, 4  ;;  %p666_p0 = pnand %p372_p13, %p629_p4  ;;  %s662_s4 = int_to_ptr.vmem [resolvable:$true] %s146_s4 }
  0x19   : > { %s134_s6 = scalar_lea.sflag [#allocation3], %s653_s25  ;;  %s422_s7 = scalar_lea.hbm %s660_s30, 32 }
  0x1a   : > { %p423_p3 = scmp.ne.s32.totalorder %s660_s30, %s422_s7  ;;  %p424_p5 = pneg %p666_p0 }
  0x1b   : > { %s427_s16 = scalar_lea.hbm %s803_s0, 64  ;;  %p428_p4 = scmp.lt.u32.totalorder %s660_s30, %s803_s0 }
  0x1c   : > { %p425_p6 = pnand %p424_p5, %p423_p3  ;;  %p429_p10 = scmp.lt.u32.totalorder %s427_s16, %s422_s7 }
  0x1d   : > { %p431_p12 = scmp.lt.u32.totalorder %s422_s7, %s660_s30 }
  0x1e   : > { %p426_p7 = pneg %p425_p6  ;;  %p430_p13 = por %p429_p10, %p428_p4 }
  0x20   : > { %p432_p1 = por %p431_p12, %p430_p13 }
  0x22   : > { %p433_p2 = pnand %p432_p1, %p426_p7 }
  0x24   : > { %436 = shalt.err (!%p433_p2)
}
  0x25   : > { %s437_s20 = scalar_lea.vmem %s662_s4, 32  ;;  %s570_s26 = smov [#allocation2]  }
  0x26   : > { %p438_p3 = scmp.ne.s32.totalorder %s662_s4, %s437_s20  ;;  %s442_s27 = sshll.u32 %s570_s26, 4  ;;  %s443_s27 = int_to_ptr.vmem [resolvable:$false] %s442_s27 }
  0x27   : > { %s444_s28 = scalar_lea.vmem %s443_s27, 64  ;;  %p445_p9 = scmp.lt.s32.totalorder %s662_s4, %s443_s27 }
  0x28   : > { %p440_p6 = pnand %p438_p3, %p424_p5  ;;  %p446_p4 = scmp.lt.s32.totalorder %s444_s28, %s437_s20 }
  0x2a   : > { %p441_p11 = pneg %p440_p6  ;;  %p447_p10 = por %p446_p4, %p445_p9 }
  0x2c   : > { %p448_p12 = pnand %p447_p10, %p441_p11 }
  0x2e   : > { %451 = shalt.err (!%p448_p12)
}
  0x2f   : > { %364 = dma.hbm_to_vmem [thread:$0]  (!%p666_p0), %s660_s30, 32, %s662_s4, %s134_s6  }
  0x30   : > { %p813_p1 = scmp.lt.s32.totalorder %s568_s14, 3  ;;  %p814_p2 = scmp.ge.s32.totalorder %s568_s14, 1 }
  0x31   : > { %s346_s3 = sshll.u32 %s564_s13, 4  ;;  %s156_s7 = scalar_lea.vmem [#allocation5], %s653_s25 }
  0x32   : > { %p702_p7 = pnand %p814_p2, %p813_p1  ;;  %s163_s8 = sshll.u32 %s156_s7, 4  ;;  %s164_s8 = int_to_ptr.vmem [resolvable:$true] %s163_s8 }
  0x33   : > { %s711_s18 = scalar_lea.hbm %s804_s1, %s346_s3  ;;  %s154_s30 = scalar_lea.sflag [#allocation6], %s653_s25 }
  0x34   : > { %s815_s29 = scalar_select %p702_p7, 1, 0 }
  0x35   : > { %s452_s4 = scalar_lea.hbm %s711_s18, 16  ;;  %s457_s20 = scalar_lea.hbm %s804_s1, 2576 }
  0x36   : > { %p453_p9 = scmp.ne.s32.totalorder %s711_s18, %s452_s4  ;;  %p458_p3 = scmp.lt.u32.totalorder %s711_s18, %s804_s1 }
  0x37   : > { %p459_p6 = scmp.lt.u32.totalorder %s457_s20, %s452_s4  ;;  %p461_p10 = scmp.lt.u32.totalorder %s452_s4, %s711_s18 }
  0x38   : > { %p455_p11 = pnand %p453_p9, %p424_p5 }
  0x39   : > { %p460_p4 = por %p459_p6, %p458_p3 }
  0x3a   : > { %p456_p13 = pneg %p455_p11 }
  0x3b   : > { %p462_p12 = por %p461_p10, %p460_p4 }
  0x3d   : > { %p463_p1 = pnand %p462_p12, %p456_p13 }
  0x3f   : > { %466 = shalt.err (!%p463_p1)
}
  0x40   : > { %s467_s25 = scalar_lea.vmem %s164_s8, 16  ;;  %s571_s28 = smov [#allocation5]  }
  0x41   : > { %p468_p2 = scmp.ne.s32.totalorder %s164_s8, %s467_s25  ;;  %s472_s3 = sshll.u32 %s571_s28, 4  ;;  %s473_s3 = int_to_ptr.vmem [resolvable:$false] %s472_s3 }
  0x42   : > { %s474_s7 = scalar_lea.vmem %s473_s3, 32  ;;  %p475_p8 = scmp.lt.s32.totalorder %s164_s8, %s473_s3 }
  0x43   : > { %p470_p9 = pnand %p468_p2, %p424_p5  ;;  %p476_p7 = scmp.lt.s32.totalorder %s474_s7, %s467_s25 }
  0x45   : > { %p471_p11 = pneg %p470_p9  ;;  %p477_p3 = por %p476_p7, %p475_p8 }
  0x47   : > { %p478_p6 = pnand %p477_p3, %p471_p11 }
  0x49   : > { %481 = shalt.err (!%p478_p6)
}
  0x4a   : > { %367 = dma.hbm_to_vmem [thread:$0]  (!%p666_p0), %s711_s18, 16, %s164_s8, %s154_s30  }
  0x4b   : > { %p816_p13 = scmp.ne.s32.totalorder %s815_s29, 0 }
  0x4c   : > { %s736_s15 = sand.u32 (!%p816_p13), 1, %s552_s10   ;;  %p817_p5 = scmp.ne.s32.totalorder (!%p816_p13), %s809_s21, 0 }
  0x4d   : > { %172 = sbr.rel (%p816_p13) target bundleno = 113 (0x71), region = 28  ;;  %s348_s16 = sshll.u32 (!%p816_p13), %s736_s15, 1 }
  0x4e   : > { %s175_s4 = scalar_lea.sflag (!%p816_p13), [#allocation3], %s736_s15  ;;  %s178_s6 = scalar_lea.vmem (!%p816_p13), [#allocation2], %s348_s16 }
  0x54   : > { %535 = dma.done.wait (%p817_p5), %s175_s4, 32  }
  0x55   : > { %537 = vsyncadd (%p817_p5), %s175_s4, 4294967264  ;;  %s184_s5 = scalar_lea.sflag [#allocation6], %s736_s15  ;;  %s186_s29 = scalar_lea.vmem [#allocation5], %s736_s15 }
  0x56   : > { %539 = dma.done.wait (%p817_p5), %s184_s5, 16  }
  0x57   : > { %541 = vsyncadd (%p817_p5), %s184_s5, 4294967280  ;;  %v211_v0 = vld [vmem:[%s178_s6] sm:$0x3]  ;;  %s210_s8 = scalar_lea.vmem [#allocation7], %s348_s16  ;;  %s352_s30 = sshll.u32 %s560_s12, 5 }
  0x58   : > { %v350_v1 = vld [vmem:[%s186_s29] ss:$0 sm:$0xff]  ;;  %s238_s18 = sshll.u32 %s210_s8, 4  ;;  %v213_v2 = vmul.f32 5.656854, %v211_v0  ;;  %s756_s21 = scalar_lea.hbm %s805_s2, %s352_s30  ;;  %s751_s18 = int_to_ptr.vmem [resolvable:$true] %s238_s18 }
  0x59   : > { %s223_s26 = scalar_lea.sflag [#allocation4], %s736_s15  ;;  %s482_s27 = scalar_lea.vmem %s751_s18, 32 }
  0x5a   : > { %v220_v3 = vadd.f32 %v350_v1, %v213_v2  ;;  %p483_p8 = scmp.ne.s32.totalorder %s751_s18, %s482_s27  ;;  %p818_p0 = scmp.ne.s32.totalorder %s810_s22, 0 }
  0x5b   : > { %s572_s12 = smov [#allocation7]  }
  0x5c   : > { %221 = vst [vmem:[%s210_s8] sm:$0x3] %v220_v3  ;;  %p484_p7 = pnand %p483_p8, %p818_p0  ;;  %s486_s25 = sshll.u32 %s572_s12, 4  ;;  %s487_s25 = int_to_ptr.vmem [resolvable:$false] %s486_s25 }
  0x5d   : > { %s488_s28 = scalar_lea.vmem %s487_s25, 64  ;;  %p489_p10 = scmp.lt.s32.totalorder %s751_s18, %s487_s25 }
  0x5e   : > { %p485_p4 = pneg %p484_p7  ;;  %p490_p12 = scmp.lt.s32.totalorder %s488_s28, %s482_s27 }
  0x60   : > { %p491_p1 = por %p490_p12, %p489_p10 }
  0x62   : > { %p492_p2 = pnand %p491_p1, %p485_p4 }
  0x64   : > { %495 = shalt.err (!%p492_p2)
}
  0x65   : > { %s496_s3 = scalar_lea.hbm %s756_s21, 32  ;;  %s500_s16 = scalar_lea.hbm %s805_s2, 64 }
  0x66   : > { %p497_p9 = scmp.ne.s32.totalorder %s756_s21, %s496_s3  ;;  %p501_p6 = scmp.lt.u32.totalorder %s756_s21, %s805_s2 }
  0x67   : > { %p502_p13 = scmp.lt.u32.totalorder %s500_s16, %s496_s3  ;;  %p504_p8 = scmp.lt.u32.totalorder %s496_s3, %s756_s21 }
  0x68   : > { %p498_p11 = pnand %p497_p9, %p818_p0 }
  0x69   : > { %p503_p5 = por %p502_p13, %p501_p6 }
  0x6a   : > { %p499_p3 = pneg %p498_p11 }
  0x6b   : > { %p505_p7 = por %p504_p8, %p503_p5 }
  0x6d   : > { %p506_p4 = pnand %p505_p7, %p499_p3 }
  0x6f   : > { %509 = shalt.err (!%p506_p4)
}
  0x70   : > { %359 = dma.vmem_to_hbm [thread:$0]  (%p818_p0), %s751_s18, 32, %s756_s21, %s223_s26  }
  0x71 PF: > { %s250_s5 = sand.u32 1, %s548_s9   ;;  %p819_p10 = scmp.ne.s32.totalorder %s811_s24, 0 }
  0x72   : > { %p820_p12 = scmp.ge.s32.totalorder %s568_s14, 2  ;;  %s251_s29 = scalar_lea.sflag [#allocation4], %s250_s5 }
  0x74   : > { %p369_p1 = pnand %p820_p12, %p819_p10 }
  0x76   : > { %543 = dma.done.wait (!%p369_p1), %s251_s29, 32  }
  0x77   : > { %545 = vsyncadd (!%p369_p1), %s251_s29, 4294967264  ;;  %s21_s14 = sadd.s32 1, %s568_s14   ;;  %s821_s9 = smov %s552_s10 }
  0x78   : > { %p18_p2 = scmp.ge.s32.totalorder %s21_s14, 4   ;;  %s822_s10 = smov %s556_s11 }
  0x79   : > { %s823_s11 = smov %s644_s23  ;;  %s824_s12 = smov %s564_s13 }
  0x7a   : > { %s825_s13 = smov %s827_s17  ;;  %20 = sbr.rel (!%p18_p2) target bundleno = 8 (0x8), region = 86 }
  0x81   :  { %256 = vsyncpa [#allocation3], 1 }
  0x82   :  { %258 = vsyncpa [#allocation3 + $0x1], 1 }
  0x83   :  { %259 = vsyncpa [#allocation6], 1 }
  0x84   :  { %261 = vsyncpa [#allocation6 + $0x1], 1 }
  0x85   :  { %262 = vsyncpa [#allocation4], 1 }
  0x86   :  { %264 = vsyncpa [#allocation4 + $0x1], 1 }

</bundles_post_ra>
